<compile_context>
chip_gen: v6e
topology: v6e:2x2x1
jax: 0.10.0
libtpu: 0.0.40
codegen_flags: <defaults>
</compile_context>

<pallas_src>
import jax
import jax.numpy as jnp
from jax.experimental import pallas as pl
from jax.experimental.pallas import tpu as pltpu

LANE = 128


def _round_up(x, m):
    return (x + m - 1) // m * m


def mlp_kernel(x_ref, w1_ref, b1_ref, w2_ref, b2_ref, o_ref):
    # fc1: (TB, In) @ (In, Hp) on the MXU, f32 accumulation.
    x = x_ref[...].astype(w1_ref.dtype)
    h = jnp.dot(x, w1_ref[...], preferred_element_type=jnp.float32)
    # Bias + ReLU in f32 (v5e has no bf16 VPU; cheap everywhere).
    h = jnp.maximum(h + b1_ref[...], 0.0)
    # fc2: (TB, Hp) @ (Hp, OutPad) on the MXU, f32 accumulation.
    out = jnp.dot(h.astype(w2_ref.dtype), w2_ref[...],
                  preferred_element_type=jnp.float32)
    o_ref[...] = (out + b2_ref[...]).astype(o_ref.dtype)


def prepare_params(w1, b1, w2, b2, *, compute_dtype=jnp.bfloat16):
    """One-time parameter prep (do NOT call per step): transpose PyTorch-layout
    (out, in) weights to (in, out), zero-pad hidden/output dims to multiples of
    128 lanes, cast weights to the MXU compute dtype. Biases stay f32."""
    hidden, in_size = w1.shape
    out_size = w2.shape[0]
    hp = _round_up(hidden, LANE)          # 50 -> 128
    op = _round_up(out_size, LANE)        # Out -> 128 (lane-dense stores)

    w1_t = jnp.zeros((in_size, hp), jnp.float32).at[:, :hidden].set(w1.T)
    b1_p = jnp.zeros((1, hp), jnp.float32).at[:, :hidden].set(b1)
    w2_t = jnp.zeros((hp, op), jnp.float32).at[:hidden, :out_size].set(w2.T)
    b2_p = jnp.zeros((1, op), jnp.float32).at[:, :out_size].set(b2)

    return (w1_t.astype(compute_dtype), b1_p,
            w2_t.astype(compute_dtype), b2_p, out_size)


def nn_forward(x, prepped, *, tile_b=512):
    """x: (B, In) float32/bfloat16. prepped: output of prepare_params.
    Returns (B, out_size) float32."""
    w1_t, b1_p, w2_t, b2_p, out_size = prepped
    B, in_size = x.shape
    hp = w1_t.shape[1]
    op = w2_t.shape[1]

    tb = min(tile_b, B)                   # block = full dim when B is small
    grid = (pl.cdiv(B, tb),)

    flops = 2 * B * (in_size * hp + hp * op)
    bytes_accessed = (x.size * x.dtype.itemsize          # x in
                      + B * op * 4                       # padded out
                      + w1_t.size * w1_t.dtype.itemsize
                      + w2_t.size * w2_t.dtype.itemsize
                      + (b1_p.size + b2_p.size) * 4)

    out_padded = pl.pallas_call(
        mlp_kernel,
        out_shape=jax.ShapeDtypeStruct((B, op), jnp.float32),
        grid=grid,
        in_specs=[
            pl.BlockSpec((tb, in_size), lambda i: (i, 0)),   # x: tiled over batch
            pl.BlockSpec((in_size, hp), lambda i: (0, 0)),   # w1: VMEM-resident
            pl.BlockSpec((1, hp), lambda i: (0, 0)),         # b1: VMEM-resident
            pl.BlockSpec((hp, op), lambda i: (0, 0)),        # w2: VMEM-resident
            pl.BlockSpec((1, op), lambda i: (0, 0)),         # b2: VMEM-resident
        ],
        out_specs=pl.BlockSpec((tb, op), lambda i: (i, 0)),
        compiler_params=pltpu.CompilerParams(
            dimension_semantics=("parallel",)),              # megacore on v7x
        cost_estimate=pl.CostEstimate(flops=flops, transcendentals=0,
                                      bytes_accessed=bytes_accessed),
    )(x, w1_t, b1_p, w2_t, b2_p)

    # Slice the zero-padded output columns back to the real output size.
    return out_padded[:, :out_size]


def init_params(key, input_size, output_size, hidden=50):
    """Deterministic init mimicking PyTorch nn.Linear default (uniform(-k, k),
    k = 1/sqrt(fan_in)), weight shape (out, in)."""
    k1, k2, k3, k4 = jax.random.split(key, 4)
    bound1 = 1.0 / (input_size ** 0.5)
    bound2 = 1.0 / (hidden ** 0.5)
    w1 = jax.random.uniform(k1, (hidden, input_size), jnp.float32, -bound1, bound1)
    b1 = jax.random.uniform(k2, (hidden,), jnp.float32, -bound1, bound1)
    w2 = jax.random.uniform(k3, (output_size, hidden), jnp.float32, -bound2, bound2)
    b2 = jax.random.uniform(k4, (output_size,), jnp.float32, -bound2, bound2)
    return w1, b1, w2, b2


if __name__ == "__main__":
    key = jax.random.PRNGKey(0)
    kx, kp = jax.random.split(key)

    batch, input_size, output_size = 256, 32, 10
    x = jax.random.normal(kx, (batch, input_size), jnp.float32)
    w1, b1, w2, b2 = init_params(kp, input_size, output_size)

    prepped = prepare_params(w1, b1, w2, b2)          # one-time prep
    out = nn_forward(x, prepped, tile_b=128)          # exercises a 2-step grid
    out = jax.block_until_ready(out)

    # Pure-JAX reference with matching bf16 quantization of the MXU operands.
    q = lambda a: a.astype(jnp.bfloat16).astype(jnp.float32)
    h_ref = jnp.maximum(q(x) @ q(w1).T + b1, 0.0)
    ref = q(h_ref) @ q(w2).T + b2

    assert out.shape == (batch, output_size)
    assert jnp.allclose(out, ref, atol=1e-2, rtol=1e-2), \
        float(jnp.max(jnp.abs(out - ref)))

    print("KERNEL_OK")
</pallas_src>

<mosaic_0001>
module attributes {stable_mosaic.version = 11 : i64} {
  func.func @mlp_kernel(%arg0: i32, %arg1: memref<128x32xf32, #tpu.memory_space<vmem>>, %arg2: memref<32x128xbf16, #tpu.memory_space<vmem>>, %arg3: memref<1x128xf32, #tpu.memory_space<vmem>>, %arg4: memref<128x128xbf16, #tpu.memory_space<vmem>>, %arg5: memref<1x128xf32, #tpu.memory_space<vmem>>, %arg6: memref<128x128xf32, #tpu.memory_space<vmem>>) attributes {dimension_semantics = [#tpu.dimension_semantics<parallel>], iteration_bounds = array<i64: 2>, scalar_prefetch = 0 : i64, scratch_operands = 0 : i64, tpu.core_type = #tpu.core_type<tc>, window_params = [{transform_indices = @transform_0, window_bounds = array<i64: 128, 32>}, {pipeline_mode = #tpu.pipeline_mode<synchronous>, transform_indices = @transform_1, window_bounds = array<i64: 32, 128>}, {pipeline_mode = #tpu.pipeline_mode<synchronous>, transform_indices = @transform_2, window_bounds = array<i64: 1, 128>}, {pipeline_mode = #tpu.pipeline_mode<synchronous>, transform_indices = @transform_3, window_bounds = array<i64: 128, 128>}, {pipeline_mode = #tpu.pipeline_mode<synchronous>, transform_indices = @transform_4, window_bounds = array<i64: 1, 128>}, {transform_indices = @transform_5, window_bounds = array<i64: 128, 128>}]} {
    %c0 = arith.constant 0 : index
    %c0_0 = arith.constant 0 : index
    %0 = vector.load %arg1[%c0, %c0_0] : memref<128x32xf32, #tpu.memory_space<vmem>>, vector<128x32xf32>
    %1 = arith.truncf %0 : vector<128x32xf32> to vector<128x32xbf16>
    %c0_1 = arith.constant 0 : index
    %c0_2 = arith.constant 0 : index
    %2 = vector.load %arg2[%c0_1, %c0_2] : memref<32x128xbf16, #tpu.memory_space<vmem>>, vector<32x128xbf16>
    %cst = arith.constant dense<0.000000e+00> : vector<128x128xf32>
    %3 = tpu.matmul %1, %2, %cst {dimension_numbers = #tpu.dot_dimension_numbers<[1], [0], [0], [1], [0, 0, 1, 1], [], []>} : vector<128x32xbf16>, vector<32x128xbf16>, vector<128x128xf32> -> vector<128x128xf32>
    %c0_3 = arith.constant 0 : index
    %c0_4 = arith.constant 0 : index
    %4 = vector.load %arg3[%c0_3, %c0_4] : memref<1x128xf32, #tpu.memory_space<vmem>>, vector<1x128xf32>
    %5 = vector.broadcast %4 : vector<1x128xf32> to vector<128x128xf32>
    %6 = arith.addf %3, %5 : vector<128x128xf32>
    %cst_5 = arith.constant 0.000000e+00 : f32
    %7 = vector.broadcast %cst_5 : f32 to vector<128x128xf32>
    %8 = arith.maximumf %6, %7 : vector<128x128xf32>
    %9 = arith.truncf %8 : vector<128x128xf32> to vector<128x128xbf16>
    %c0_6 = arith.constant 0 : index
    %c0_7 = arith.constant 0 : index
    %10 = vector.load %arg4[%c0_6, %c0_7] : memref<128x128xbf16, #tpu.memory_space<vmem>>, vector<128x128xbf16>
    %cst_8 = arith.constant dense<0.000000e+00> : vector<128x128xf32>
    %11 = tpu.matmul %9, %10, %cst_8 {dimension_numbers = #tpu.dot_dimension_numbers<[1], [0], [0], [1], [0, 0, 1, 1], [], []>} : vector<128x128xbf16>, vector<128x128xbf16>, vector<128x128xf32> -> vector<128x128xf32>
    %c0_9 = arith.constant 0 : index
    %c0_10 = arith.constant 0 : index
    %12 = vector.load %arg5[%c0_9, %c0_10] : memref<1x128xf32, #tpu.memory_space<vmem>>, vector<1x128xf32>
    %13 = vector.broadcast %12 : vector<1x128xf32> to vector<128x128xf32>
    %14 = arith.addf %11, %13 : vector<128x128xf32>
    %c0_11 = arith.constant 0 : index
    %c0_12 = arith.constant 0 : index
    %15 = vector.load %arg6[%c0_11, %c0_12] : memref<128x128xf32, #tpu.memory_space<vmem>>, vector<128x128xf32>
    tpu.vector_store %arg6[%c0_11, %c0_12], %14 {strides = array<i32>} : memref<128x128xf32, #tpu.memory_space<vmem>>, vector<128x128xf32>,
    return
  }
  func.func @transform_0(%arg0: i32) -> (i32, i32) {
    %c0_i32 = arith.constant 0 : i32
    %c0_i32_0 = arith.constant 0 : i32
    return %arg0, %c0_i32 : i32, i32
  }
  func.func @transform_1(%arg0: i32) -> (i32, i32) {
    %c0_i32 = arith.constant 0 : i32
    %c0_i32_0 = arith.constant 0 : i32
    %c0_i32_1 = arith.constant 0 : i32
    return %c0_i32, %c0_i32_0 : i32, i32
  }
  func.func @transform_2(%arg0: i32) -> (i32, i32) {
    %c0_i32 = arith.constant 0 : i32
    %c0_i32_0 = arith.constant 0 : i32
    %c0_i32_1 = arith.constant 0 : i32
    return %c0_i32, %c0_i32_0 : i32, i32
  }
  func.func @transform_3(%arg0: i32) -> (i32, i32) {
    %c0_i32 = arith.constant 0 : i32
    %c0_i32_0 = arith.constant 0 : i32
    %c0_i32_1 = arith.constant 0 : i32
    return %c0_i32, %c0_i32_0 : i32, i32
  }
  func.func @transform_4(%arg0: i32) -> (i32, i32) {
    %c0_i32 = arith.constant 0 : i32
    %c0_i32_0 = arith.constant 0 : i32
    %c0_i32_1 = arith.constant 0 : i32
    return %c0_i32, %c0_i32_0 : i32, i32
  }
  func.func @transform_5(%arg0: i32) -> (i32, i32) {
    %c0_i32 = arith.constant 0 : i32
    %c0_i32_0 = arith.constant 0 : i32
    return %arg0, %c0_i32 : i32, i32
  }
}

</mosaic_0001>

<bundles_post_ra>
// kernel: tpu_custom_call.1
= control target key start
LH: loop header
LB: loop body
LE: loop exit
PB: predicated region body
PF: predicated region fallthrough
CT: control target
= control target key end

     0   :  { %10 = vsyncpa [#allocation3], 0  ;;  %s1139_s0 = inlined_call_operand.vmem [shape: f32[256,32], index: 0, kind: input, shape index: {}]   ;;  %s1140_s1 = inlined_call_operand.vmem [shape: bf16[32,128], index: 1, kind: input, shape index: {}]   ;;  %s1141_s2 = inlined_call_operand.vmem [shape: f32[1,128], index: 2, kind: input, shape index: {}]   ;;  %s1142_s3 = inlined_call_operand.vmem [shape: bf16[128,128], index: 3, kind: input, shape index: {}]   ;;  %s1143_s4 = inlined_call_operand.vmem [shape: f32[1,128], index: 4, kind: input, shape index: {}]   ;;  %s1144_s5 = inlined_call_operand.hbm [shape: f32[256,128], index: 5, kind: output, shape index: {}]  }
   0x1   :  { %12 = vsyncpa [#allocation3 + $0x1], 0  ;;  %s953_s18 = smov 0   ;;  %s955_s19 = smov 0  }
   0x2   :  { %s957_s20 = smov 0   ;;  %s959_s21 = smov 0  }
   0x3 LB: > { %s974_s22 = sadd.s32 4294967295, %s918_s21   ;;  %s680_s23 = sadd.s32 4294967294, %s918_s21   ;;  %s918_s21 = sphi %s959_s21, %s1150_s21   ;;  %s914_s20 = sphi %s957_s20, %s1149_s20   ;;  %s910_s19 = sphi %s955_s19, %s1148_s19   ;;  %s906_s18 = sphi %s953_s18, %s1147_s18  }
   0x4   : > { %s978_s24 = sadd.s32 1, %s918_s21   ;;  %s135_s25 = sadd.s32 1, %s914_s20 }
   0x5   : > { %s132_s26 = ssub.s32 %s918_s21, %s978_s24  ;;  %p145_p0 = scmp.ne.s32.totalorder %s914_s20, %s910_s19 }
   0x6   : > { %p133_p1 = scmp.eq.s32.totalorder %s132_s26, 0  ;;  %p146_p2 = scmp.eq.s32.totalorder %s974_s22, 1 }
   0x7   : > { %p151_p3 = scmp.ne.s32.totalorder %s910_s19, %s906_s18  ;;  %p152_p4 = scmp.eq.s32.totalorder %s680_s23, 1 }
   0x8   : > { %s989_s27 = scalar_select %p133_p1, %s914_s20, %s135_s25  }
   0x9   : > { %p991_p5 = por %p146_p2, %p145_p0  ;;  %p995_p6 = por %p152_p4, %p151_p3 }
   0xa   : > { %p683_p7 = scmp.ge.s32.totalorder %s918_s21, 1  ;;  %p191_p8 = scmp.lt.s32.totalorder %s918_s21, 3 }
   0xc   : > { %p192_p9 = pnand %p683_p7, %p191_p8 }
   0xd   : > { %s685_s7 = sshll.u32 (!%p192_p9), %s974_s22, 4  ;;  %s216_s16 = sand.u32 (!%p192_p9), 1, %s910_s19  }
   0xe   : > { %195 = sbr.rel (%p192_p9) target bundleno = 473 (0x1d9), region = 40  ;;  %p220_p10 = scmp.lt.s32.totalorder (!%p192_p9), %s685_s7, 31 }
   0xf   : > { %s712_s30 = sshll.u32 (!%p192_p9), %s974_s22, 11  ;;  %s1099_s22 = scalar_lea.sflag (!%p192_p9), [#allocation3], %s216_s16 }
  0x10   : > { %s1091_s9 = scalar_lea.hbm (!%p192_p9), %s1144_s5, %s712_s30  ;;  %s920_s11 = smov (!%p192_p9), [#allocation2]  }
  0x11   : > { %s862_s12 = sshll.u32 (!%p192_p9), %s920_s11, 4  ;;  %s863_s12 = int_to_ptr.vmem [resolvable:$false] %s862_s12 }
  0x12   : > { %s864_s13 = scalar_lea.vmem (!%p192_p9), %s863_s12, 4096 }
  0x13   : > { %v848_v0 = vld [vmem:[%s1140_s1 + $0x8] sm:$0xff]   ;;  %v849_v1 = vld [vmem:[%s1140_s1] sm:$0xff]   ;;  %v850_v2 = vld [vmem:[%s1142_s3 + $0x38] sm:$0xff]   ;;  %s1152_s7 = smov (!%p220_p10, %s685_s7), 31  ;;  %vm274_vm0 = vcmask 261120  }
  0x14   : > { %739 = vmatprep.subr.bf16.mxu0 %v848_v0  ;;  %v851_v3 = vld [vmem:[%s1142_s3 + $0x30] sm:$0xff]   ;;  %791 = vmatprep.subr.bf16.mxu1 %v850_v2  ;;  %s686_s14 = sshll.u32 %s1152_s7, 3  ;;  %v852_v4 = vld [vmem:[%s1142_s3 + $0x28] sm:$0xff]   ;;  %v853_v14 = vld [vmem:[%s1142_s3 + $0x20] sm:$0xff]  }
  0x15   : > { %740 = vmatpush3.bf16.msra.mxu0 %v848_v0  ;;  %799 = vmatpush3.bf16.msra.mxu1 %v850_v2  ;;  %s1017_s17 = scalar_lea.vmem %s1139_s0, %s686_s14  ;;  %v854_v21 = vld [vmem:[%s1142_s3 + $0x18] sm:$0xff]   ;;  %v855_v31 = vld [vmem:[%s1142_s3 + $0x10] sm:$0xff]   ;;  %v856_v32 = vld [vmem:[%s1142_s3 + $0x8] sm:$0xff]  }
  0x16   : > { %741 = vmatprep.subr.bf16.mxu0 %v849_v1  ;;  %792 = vmatprep.subr.bf16.mxu1 %v851_v3  ;;  %v227_v5 = vld [vmem:[%s1017_s17] sm:$0xff]  ;;  %v228_v6 = vld [vmem:[%s1017_s17 + $0x8] sm:$0xff]  ;;  %v229_v7 = vld [vmem:[%s1017_s17 + $0x10] sm:$0xff] }
  0x17   : > { %v243_v8 = vpack.c.bf16 %v228_v6, %v227_v5  ;;  %v230_v9 = vld [vmem:[%s1017_s17 + $0x18] sm:$0xff]  ;;  %v231_v10 = vld [vmem:[%s1017_s17 + $0x20] sm:$0xff]  ;;  %v232_v11 = vld [vmem:[%s1017_s17 + $0x28] sm:$0xff] }
  0x18   : > { %v244_v12 = vpack.c.bf16 %v230_v9, %v229_v7  ;;  %v245_v13 = vpack.c.bf16 %v232_v11, %v231_v10  ;;  %v233_v15 = vld [vmem:[%s1017_s17 + $0x30] sm:$0xff]  ;;  %v234_v16 = vld [vmem:[%s1017_s17 + $0x38] sm:$0xff]  ;;  %v235_v17 = vld [vmem:[%s1017_s17 + $0x40] sm:$0xff] }
  0x19   : > { %742 = vmatpush3.bf16.msra.mxu0 %v849_v1  ;;  %800 = vmatpush3.bf16.msra.mxu1 %v851_v3  ;;  %v236_v18 = vld [vmem:[%s1017_s17 + $0x48] sm:$0xff]  ;;  %v246_v19 = vpack.c.bf16 %v234_v16, %v233_v15  ;;  %v237_v22 = vld [vmem:[%s1017_s17 + $0x50] sm:$0xff]  ;;  %v238_v23 = vld [vmem:[%s1017_s17 + $0x58] sm:$0xff] }
  0x1a   : > { %759 = vmatprep.subr.bf16.mxu0 %v850_v2  ;;  %743 = vmatprep.mubr.msk.bf16.mxu0 %vm274_vm0, %v243_v8  ;;  %v247_v20 = vpack.c.bf16 %v236_v18, %v235_v17  ;;  %v239_v24 = vld [vmem:[%s1017_s17 + $0x60] sm:$0xff]  ;;  %v240_v25 = vld [vmem:[%s1017_s17 + $0x68] sm:$0xff]  ;;  %v248_v26 = vpack.c.bf16 %v238_v23, %v237_v22  ;;  %v241_v28 = vld [vmem:[%s1017_s17 + $0x70] sm:$0xff] }
  0x1b   : > { %793 = vmatprep.subr.bf16.mxu1 %v852_v4  ;;  %v249_v27 = vpack.c.bf16 %v240_v25, %v239_v24  ;;  %v242_v29 = vld [vmem:[%s1017_s17 + $0x78] sm:$0xff]  ;;  %v857_v33 = vld [vmem:[%s1142_s3] sm:$0xff]   ;;  %s684_s17 = sshll.u32 %s216_s16, 7 }
  0x1c   : > { %744 = vmatmul.mubr.msk.bf16.vlgmr.msra.gmra.mxu0 %vm274_vm0, %v244_v12  ;;  %v250_v30 = vpack.c.bf16 %v242_v29, %v241_v28  ;;  %v687_v36 = vld [vmem:[%s1141_s2] ss:$0 sm:$0xff]  ;;  %s1070_s26 = scalar_lea.vmem [#allocation2], %s684_s17 }
  0x1d   : > { %747 = vmatprep.mubr.msk.bf16.mxu0 %vm274_vm0, %v245_v13  ;;  %760 = vmatpush3.bf16.msra.mxu0 %v850_v2  ;;  %s618_s6 = sshll.u32 %s1070_s26, 4  ;;  %s1093_s6 = int_to_ptr.vmem [resolvable:$true] %s618_s6 }
  0x1e   : > { %761 = vmatprep.subr.bf16.mxu0 %v851_v3  ;;  %801 = vmatpush3.bf16.msra.mxu1 %v852_v4  ;;  %s858_s10 = scalar_lea.vmem %s1093_s6, 2048  ;;  %p865_p0 = scmp.lt.s32.totalorder %s1093_s6, %s863_s12 }
  0x1f   : > { %794 = vmatprep.subr.bf16.mxu1 %v853_v14  ;;  %p859_p11 = scmp.ne.s32.totalorder %s1093_s6, %s858_s10  ;;  %p866_p1 = scmp.lt.s32.totalorder %s864_s13, %s858_s10 }
  0x21   : > { %762 = vmatpush3.bf16.msra.mxu0 %v851_v3  ;;  %p860_p12 = pnand %p859_p11, %p991_p5  ;;  %p867_p2 = por %p866_p1, %p865_p0 }
  0x22   : > { %763 = vmatprep.subr.bf16.mxu0 %v852_v4  ;;  %802 = vmatpush3.bf16.msra.mxu1 %v853_v14 }
  0x23   : > { %795 = vmatprep.subr.bf16.mxu1 %v854_v21  ;;  %p861_p13 = pneg %p860_p12 }
  0x24   : > { %748 = vmatmul.mubr.msk.bf16.gmra.mxu0 %vm274_vm0, %v246_v19 }
  0x25   : > { %751 = vmatprep.mubr.msk.bf16.mxu0 %vm274_vm0, %v247_v20  ;;  %764 = vmatpush3.bf16.msra.mxu0 %v852_v4  ;;  %p868_p3 = pnand %p867_p2, %p861_p13 }
  0x26   : > { %765 = vmatprep.subr.bf16.mxu0 %v853_v14  ;;  %803 = vmatpush3.bf16.msra.mxu1 %v854_v21 }
  0x27   : > { %796 = vmatprep.subr.bf16.mxu1 %v855_v31 }
  0x29   : > { %766 = vmatpush3.bf16.msra.mxu0 %v853_v14 }
  0x2a   : > { %767 = vmatprep.subr.bf16.mxu0 %v854_v21  ;;  %804 = vmatpush3.bf16.msra.mxu1 %v855_v31 }
  0x2b   : > { %797 = vmatprep.subr.bf16.mxu1 %v856_v32 }
  0x2c   : > { %752 = vmatmul.mubr.msk.bf16.gmra.mxu0 %vm274_vm0, %v248_v26 }
  0x2d   : > { %755 = vmatprep.mubr.msk.bf16.mxu0 %vm274_vm0, %v249_v27  ;;  %768 = vmatpush3.bf16.msra.mxu0 %v854_v21  ;;  %v698_v27 = vld [vmem:[%s1143_s4] ss:$0 sm:$0xff] }
  0x2e   : > { %769 = vmatprep.subr.bf16.mxu0 %v855_v31  ;;  %805 = vmatpush3.bf16.msra.mxu1 %v856_v32 }
  0x2f   : > { %798 = vmatprep.subr.bf16.mxu1 %v857_v33 }
  0x31   : > { %770 = vmatpush3.bf16.msra.mxu0 %v855_v31 }
  0x32   : > { %771 = vmatprep.subr.bf16.mxu0 %v856_v32  ;;  %806 = vmatpush3.bf16.msra.mxu1 %v857_v33 }
  0x34   : > { %756 = vmatmul.mubr.msk.bf16.gmra.mxu0 %vm274_vm0, %v250_v30 }
  0x35   : > { %772 = vmatpush3.bf16.msra.mxu0 %v856_v32 }
  0x36   : > { %773 = vmatprep.subr.bf16.mxu0 %v857_v33 }
  0x39   : > { %774 = vmatpush3.bf16.msra.mxu0 %v857_v33 }
  0xdc   : > { %v745_v34 = vpop.f32.mrf.mxu0 }
  0xdd   : > { %v342_v40 = vadd.f32 %v745_v34, %v687_v36 }
  0xde   : > { %v333_v35 = vpop.f32.mrf.mxu0 }
  0xdf   : > { %v334_v38 = vadd.f32 %v687_v36, %v333_v35  ;;  %v398_v47 = vmax.f32 %v342_v40, 0.0 }
  0xe0   : > { %v746_v37 = vpop.f32.mrf.mxu0 }
  0xe1   : > { %v345_v39 = vadd.f32 %v746_v37, %v687_v36  ;;  %v396_v45 = vmax.f32 %v334_v38, 0.0 }
  0xe2   : > { %v336_v41 = vpop.f32.mrf.mxu0 }
  0xe3   : > { %v337_v42 = vadd.f32 %v687_v36, %v336_v41  ;;  %v399_v43 = vmax.f32 %v345_v39, 0.0 }
  0xe4   : > { %v749_v44 = vpop.f32.mrf.mxu0 }
  0xe5   : > { %v397_v46 = vmax.f32 %v337_v42, 0.0  ;;  %v413_v50 = vpack.c.bf16 %v399_v43, %v398_v47  ;;  %v358_v54 = vadd.f32 %v749_v44, %v687_v36 }
  0xe6   : > { %v349_v48 = vpop.f32.mrf.mxu0 }
  0xe7   : > { %v412_v49 = vpack.c.bf16 %v397_v46, %v396_v45  ;;  %v350_v52 = vadd.f32 %v687_v36, %v349_v48  ;;  %v402_v61 = vmax.f32 %v358_v54, 0.0 }
  0xe8   : > { %v750_v51 = vpop.f32.mrf.mxu0 }
  0xe9   : > { %v361_v53 = vadd.f32 %v750_v51, %v687_v36  ;;  %775 = vmatprep.mubr.bf16.mxu0 %v412_v49  ;;  %v400_v59 = vmax.f32 %v350_v52, 0.0 }
  0xea   : > { %v352_v55 = vpop.f32.mrf.mxu0  ;;  %776 = vmatmul.mubr.bf16.vlgmr.msra.gmra.mxu0 %v413_v50 }
  0xeb   : > { %v353_v56 = vadd.f32 %v687_v36, %v352_v55  ;;  %v403_v57 = vmax.f32 %v361_v53, 0.0 }
  0xec   : > { %v753_v58 = vpop.f32.mrf.mxu0 }
  0xed   : > { %v401_v60 = vmax.f32 %v353_v56, 0.0  ;;  %v415_v0 = vpack.c.bf16 %v403_v57, %v402_v61  ;;  %v374_v4 = vadd.f32 %v753_v58, %v687_v36 }
  0xee   : > { %v365_v62 = vpop.f32.mrf.mxu0 }
  0xef   : > { %v414_v63 = vpack.c.bf16 %v401_v60, %v400_v59  ;;  %v366_v2 = vadd.f32 %v687_v36, %v365_v62  ;;  %v406_v11 = vmax.f32 %v374_v4, 0.0 }
  0xf0   : > { %v754_v1 = vpop.f32.mrf.mxu0 }
  0xf1   : > { %v377_v3 = vadd.f32 %v754_v1, %v687_v36  ;;  %779 = vmatprep.mubr.bf16.mxu1 %v414_v63  ;;  %v404_v9 = vmax.f32 %v366_v2, 0.0 }
  0xf2   : > { %v368_v5 = vpop.f32.mrf.mxu0  ;;  %780 = vmatmul.mubr.bf16.vlgmr.msra.gmra.mxu1 %v415_v0 }
  0xf3   : > { %v369_v6 = vadd.f32 %v687_v36, %v368_v5  ;;  %v407_v7 = vmax.f32 %v377_v3, 0.0 }
  0xf4   : > { %v757_v8 = vpop.f32.mrf.mxu0 }
  0xf5   : > { %v405_v10 = vmax.f32 %v369_v6, 0.0  ;;  %v417_v14 = vpack.c.bf16 %v407_v7, %v406_v11  ;;  %v390_v18 = vadd.f32 %v757_v8, %v687_v36 }
  0xf6   : > { %v381_v12 = vpop.f32.mrf.mxu0 }
  0xf7   : > { %v416_v13 = vpack.c.bf16 %v405_v10, %v404_v9  ;;  %v382_v16 = vadd.f32 %v687_v36, %v381_v12  ;;  %v410_v24 = vmax.f32 %v390_v18, 0.0 }
  0xf8   : > { %v758_v15 = vpop.f32.mrf.mxu0 }
  0xf9   : > { %v393_v17 = vadd.f32 %v758_v15, %v687_v36  ;;  %783 = vmatprep.mubr.bf16.mxu1 %v416_v13  ;;  %v408_v22 = vmax.f32 %v382_v16, 0.0 }
  0xfa   : > { %v384_v19 = vpop.f32.mrf.mxu0  ;;  %784 = vmatmul.mubr.bf16.gmra.mxu1 %v417_v14 }
  0xfb   : > { %v385_v20 = vadd.f32 %v687_v36, %v384_v19  ;;  %v411_v21 = vmax.f32 %v393_v17, 0.0 }
  0xfd   : > { %v409_v23 = vmax.f32 %v385_v20, 0.0  ;;  %v419_v26 = vpack.c.bf16 %v411_v21, %v410_v24 }
  0xff   : > { %v418_v25 = vpack.c.bf16 %v409_v23, %v408_v22 }
 0x101   : > { %787 = vmatprep.mubr.bf16.mxu1 %v418_v25 }
 0x102   : > { %788 = vmatmul.mubr.bf16.gmra.mxu1 %v419_v26 }
 0x1aa   : > { %v777_v28 = vpop.f32.mrf.mxu0 }
 0x1ab   : > { %v534_v29 = vadd.f32 %v777_v28, %v698_v27 }
 0x1ac   : > { %v525_v30 = vpop.f32.mrf.mxu0 }
 0x1ad   : > { %590 = vst [vmem:[%s1070_s26 + $0x10] sm:$0xff] %v534_v29  ;;  %v526_v31 = vadd.f32 %v698_v27, %v525_v30 }
 0x1ae   : > { %v778_v32 = vpop.f32.mrf.mxu0 }
 0x1af   : > { %588 = vst [vmem:[%s1070_s26] sm:$0xff] %v526_v31  ;;  %v537_v33 = vadd.f32 %v778_v32, %v698_v27 }
 0x1b0   : > { %v528_v34 = vpop.f32.mrf.mxu0 }
 0x1b1   : > { %591 = vst [vmem:[%s1070_s26 + $0x18] sm:$0xff] %v537_v33  ;;  %v529_v35 = vadd.f32 %v698_v27, %v528_v34 }
 0x1b2   : > { %v781_v36 = vpop.f32.mrf.mxu1 }
 0x1b3   : > { %589 = vst [vmem:[%s1070_s26 + $0x8] sm:$0xff] %v529_v35  ;;  %v550_v37 = vadd.f32 %v781_v36, %v698_v27 }
 0x1b4   : > { %v541_v38 = vpop.f32.mrf.mxu1 }
 0x1b5   : > { %594 = vst [vmem:[%s1070_s26 + $0x30] sm:$0xff] %v550_v37  ;;  %v542_v39 = vadd.f32 %v698_v27, %v541_v38 }
 0x1b6   : > { %v782_v40 = vpop.f32.mrf.mxu1 }
 0x1b7   : > { %592 = vst [vmem:[%s1070_s26 + $0x20] sm:$0xff] %v542_v39  ;;  %v553_v41 = vadd.f32 %v782_v40, %v698_v27 }
 0x1b8   : > { %v544_v42 = vpop.f32.mrf.mxu1 }
 0x1b9   : > { %595 = vst [vmem:[%s1070_s26 + $0x38] sm:$0xff] %v553_v41  ;;  %v545_v43 = vadd.f32 %v698_v27, %v544_v42 }
 0x1ba   : > { %v785_v44 = vpop.f32.mrf.mxu1 }
 0x1bb   : > { %593 = vst [vmem:[%s1070_s26 + $0x28] sm:$0xff] %v545_v43  ;;  %v566_v45 = vadd.f32 %v785_v44, %v698_v27 }
 0x1bc   : > { %v557_v46 = vpop.f32.mrf.mxu1 }
 0x1bd   : > { %598 = vst [vmem:[%s1070_s26 + $0x50] sm:$0xff] %v566_v45  ;;  %v558_v47 = vadd.f32 %v698_v27, %v557_v46 }
 0x1be   : > { %v786_v48 = vpop.f32.mrf.mxu1 }
 0x1bf   : > { %596 = vst [vmem:[%s1070_s26 + $0x40] sm:$0xff] %v558_v47  ;;  %v569_v49 = vadd.f32 %v786_v48, %v698_v27 }
 0x1c0   : > { %v560_v50 = vpop.f32.mrf.mxu1 }
 0x1c1   : > { %599 = vst [vmem:[%s1070_s26 + $0x58] sm:$0xff] %v569_v49  ;;  %v561_v51 = vadd.f32 %v698_v27, %v560_v50 }
 0x1c2   : > { %v789_v52 = vpop.f32.mrf.mxu1 }
 0x1c3   : > { %597 = vst [vmem:[%s1070_s26 + $0x48] sm:$0xff] %v561_v51  ;;  %v582_v53 = vadd.f32 %v789_v52, %v698_v27 }
 0x1c4   : > { %v573_v54 = vpop.f32.mrf.mxu1 }
 0x1c5   : > { %602 = vst [vmem:[%s1070_s26 + $0x70] sm:$0xff] %v582_v53  ;;  %v574_v55 = vadd.f32 %v698_v27, %v573_v54 }
 0x1c6   : > { %v790_v56 = vpop.f32.mrf.mxu1 }
 0x1c7   : > { %600 = vst [vmem:[%s1070_s26 + $0x60] sm:$0xff] %v574_v55  ;;  %v585_v57 = vadd.f32 %v790_v56, %v698_v27 }
 0x1c8   : > { %v576_v58 = vpop.f32.mrf.mxu1 }
 0x1c9   : > { %603 = vst [vmem:[%s1070_s26 + $0x78] sm:$0xff] %v585_v57  ;;  %v577_v59 = vadd.f32 %v698_v27, %v576_v58 }
 0x1cb   : > { %601 = vst [vmem:[%s1070_s26 + $0x68] sm:$0xff] %v577_v59 }
 0x1cc   : > { %871 = shalt.err (!%p868_p3)
}
 0x1cd   : > { %s872_s14 = scalar_lea.hbm %s1091_s9, 2048  ;;  %s876_s17 = scalar_lea.hbm %s1144_s5, 4096 }
 0x1ce   : > { %p873_p4 = scmp.ne.s32.totalorder %s1091_s9, %s872_s14  ;;  %p877_p9 = scmp.lt.s32.totalorder %s1091_s9, %s1144_s5 }
 0x1cf   : > { %p878_p10 = scmp.lt.s32.totalorder %s876_s17, %s872_s14 }
 0x1d0   : > { %p874_p7 = pnand %p873_p4, %p991_p5 }
 0x1d1   : > { %p879_p11 = por %p878_p10, %p877_p9 }
 0x1d2   : > { %p875_p8 = pneg %p874_p7 }
 0x1d4   : > { %p880_p12 = pnand %p879_p11, %p875_p8 }
 0x1d6   : > { %883 = shalt.err (!%p880_p12)
}
 0x1d7   : > { %s921_s26 = smov 128   ;;  %s922_s30 = smov 8  }
 0x1d8   : > { %807 = dma.vmem_to_hbm [thread:$0]  (%p991_p5), %s1093_s6, 2048, %s1091_s9, %s1099_s22, %s921_s26, %s921_s26, %s922_s30  }
 0x1d9 PF: > { %p813_p13 = scmp.ge.s32.totalorder %s918_s21, 2  ;;  %s633_s7 = sand.u32 1, %s906_s18  }
 0x1da   : > { %s634_s8 = scalar_lea.sflag [#allocation3], %s633_s7 }
 0x1db   : > { %p810_p0 = pnand %p813_p13, %p995_p6 }
 0x1dd   : > { %p811_p1 = pneg %p810_p0 }
 0x1df   : > { %901 = dma.done.wait (%p811_p1), %s634_s8, 2048  }
 0x1e0   : > { %903 = vsyncadd (%p811_p1), %s634_s8, 4294965248  ;;  %p15_p2 = scmp.ge.s32.totalorder %s978_s24, 4   ;;  %s1147_s18 = smov %s910_s19 }
 0x1e1   : > { %s1148_s19 = smov %s914_s20  ;;  %s1149_s20 = smov %s989_s27 }
 0x1e2   : > { %s1150_s21 = smov %s978_s24  ;;  %17 = sbr.rel (!%p15_p2) target bundleno = 3 (0x3), region = 75 }
 0x1e7   :  { %639 = vsyncpa [#allocation3], 1 }
 0x1e8   :  { %641 = vsyncpa [#allocation3 + $0x1], 1 }

</bundles_post_ra>
